<compile_context>
chip_gen: v5e
topology: v5e:2x2
jax: 0.10.0
libtpu: 0.0.40
codegen_flags: <defaults>
</compile_context>

<pallas_src>
import functools

import jax
import jax.numpy as jnp
from jax.experimental import pallas as pl
from jax.experimental.pallas import tpu as pltpu


def _vmem_capacity_bytes():
    """Physical VMEM per TensorCore; conservative fallback if query unavailable."""
    try:
        info = pltpu.get_tpu_info()
        cap = getattr(info, "vmem_capacity_bytes", None)
        if cap:
            return int(cap)
    except Exception:
        pass
    return 64 * 1024 * 1024  # v7x per-core VMEM (smallest of v5e/v6e/v7x)


def _pick_tn(n):
    """Divisor of n usable as the batch tile.

    Must give a legal output block (TN % 8 == 0 or TN == N); prefer >= 2 tiles
    along N (v7x megacore) and TN <= 128.
    """
    cands = [d for d in range(8, min(128, n) + 1, 8) if n % d == 0]
    two_tile = [d for d in cands if d <= n // 2]
    if two_tile:
        return max(two_tile)
    if cands:
        return max(cands)
    return n  # single full-N tile (block dim == full array dim is always legal)


def _basic_fc_kernel(x_ref, w1_ref, b1_ref, w2_ref, b2_ref, o_ref, acc_ref,
                     *, inv_s, true_s, ts, mask_last):
    s = pl.program_id(1)
    last = pl.num_programs(1) - 1

    @pl.when(s == 0)
    def _():
        acc_ref[...] = jnp.zeros_like(acc_ref)

    # Partial spatial sum for this tile (f32 accumulation, bf16 input supported).
    xblk = x_ref[...].astype(jnp.float32)                           # (TN, C, TS)
    if mask_last:
        # Ragged last S tile: VMEM reads past S are garbage -> zero them out.
        lane = jax.lax.broadcasted_iota(jnp.int32, (1, 1, ts), 2)
        valid = (s * ts + lane) < true_s
        xblk = jnp.where(valid, xblk, 0.0)
    acc_ref[...] += jnp.sum(xblk, axis=-1)                          # (TN, C)

    @pl.when(s == last)
    def _():
        # Apply the 1/S mean scale exactly once (global average pool).
        pooled = acc_ref[...] * inv_s                               # (TN, C)

        # Conv3dBlock(C_in, 256, 1, norm=False): 1x1x1 conv == dense, then ReLU.
        h = jnp.dot(pooled, w1_ref[...],
                    preferred_element_type=jnp.float32) + b1_ref[...]
        h = jnp.maximum(h, 0.0)                                     # (TN, 256)

        # Conv3dBlock(256, nb_classes, 1, dp=0.5): dense + (BN=id) + ReLU + (Dropout=id).
        o = jnp.dot(h, w2_ref[...],
                    preferred_element_type=jnp.float32) + b2_ref[...]
        o = jnp.maximum(o, 0.0)                                     # (TN, nb_classes)

        o_ref[...] = o.astype(o_ref.dtype)


def basic_fc_forward(x_ncdhw, w1, b1, w2, b2, *, max_slab_bytes=None):
    """x_ncdhw: (N, C_in, D, H, W) f32/bf16. Returns (N, nb_classes, 1, 1, 1) f32."""
    N, C, D, H, W = x_ncdhw.shape
    S = D * H * W
    hidden = w1.shape[1]
    nb_classes = w2.shape[1]
    itemsize = x_ncdhw.dtype.itemsize

    x = x_ncdhw.reshape(N, C, S)   # no padding copies; ragged tiles handled in-kernel

    # Batch tile: divisor of N, legal output block, >= 2 tiles when possible.
    TN = _pick_tn(N)
    grid_n = N // TN

    # Spatial tile: grow until the double-buffered input slab hits the VMEM budget.
    vmem = _vmem_capacity_bytes()
    slab_budget = min(int(0.6 * vmem), 64 << 20)          # double-buffered x slab cap
    if max_slab_bytes is not None:
        slab_budget = int(max_slab_bytes)
    per_buf = max(slab_budget // 2, 1)
    ts_budget = max(128, (per_buf // (TN * C * itemsize)) // 128 * 128)
    if S <= ts_budget:
        TS = S                     # single reduction step; full-dim block is legal
    else:
        TS = ts_budget             # multiple of 128 -> lane-aligned
    grid_s = pl.cdiv(S, TS)
    mask_last = (S % TS) != 0
    inv_s = 1.0 / float(S)

    # Scoped-VMEM limit: what we actually need (+ headroom), capped below physical.
    x_slab = 2 * TN * C * TS * itemsize
    w_bytes = 2 * 4 * (C * hidden + hidden + hidden * nb_classes + nb_classes)
    needed = x_slab + w_bytes + (4 << 20)
    vmem_limit = min(int(0.9 * vmem), max(needed, 32 << 20))

    out = pl.pallas_call(
        functools.partial(_basic_fc_kernel, inv_s=inv_s, true_s=S, ts=TS,
                          mask_last=mask_last),
        out_shape=jax.ShapeDtypeStruct((N, nb_classes), jnp.float32),
        grid_spec=pltpu.PrefetchScalarGridSpec(
            num_scalar_prefetch=0,
            grid=(grid_n, grid_s),
            in_specs=[
                pl.BlockSpec((TN, C, TS), lambda n, s: (n, 0, s)),
                pl.BlockSpec((C, hidden), lambda n, s: (0, 0)),
                pl.BlockSpec((1, hidden), lambda n, s: (0, 0)),
                pl.BlockSpec((hidden, nb_classes), lambda n, s: (0, 0)),
                pl.BlockSpec((1, nb_classes), lambda n, s: (0, 0)),
            ],
            out_specs=pl.BlockSpec((TN, nb_classes), lambda n, s: (n, 0)),
            scratch_shapes=[pltpu.VMEM((TN, C), jnp.float32)],
        ),
        compiler_params=pltpu.CompilerParams(
            # N axis is embarrassingly parallel (megacore on v7x); S is the
            # reduction axis and must stay last / "arbitrary".
            dimension_semantics=("parallel", "arbitrary"),
            vmem_limit_bytes=vmem_limit,
        ),
    )(x, w1, b1, w2, b2)

    return out.reshape(N, nb_classes, 1, 1, 1)


def reference_forward(x_ncdhw, w1, b1, w2, b2):
    pooled = jnp.mean(x_ncdhw.astype(jnp.float32), axis=(2, 3, 4))  # (N, C)
    h = jnp.maximum(pooled @ w1 + b1, 0.0)                          # (N, 256)
    o = jnp.maximum(h @ w2 + b2, 0.0)                               # (N, nb_classes)
    return o.reshape(o.shape[0], o.shape[1], 1, 1, 1)


def _make_params(key, c_in, hidden, nb_classes):
    kw1, kb1, kw2, kb2 = jax.random.split(key, 4)
    w1 = jax.random.normal(kw1, (c_in, hidden), dtype=jnp.float32) * 0.05
    b1 = jax.random.normal(kb1, (1, hidden), dtype=jnp.float32) * 0.01
    w2 = jax.random.normal(kw2, (hidden, nb_classes), dtype=jnp.float32) * 0.05
    b2 = jax.random.normal(kb2, (1, nb_classes), dtype=jnp.float32) * 0.01
    return w1, b1, w2, b2


if __name__ == "__main__":
    HIDDEN = 256  # fixed by the module (Conv3dBlock(C_in, 256, 1))
    key = jax.random.PRNGKey(0)
    k1, k2, k3, k4 = jax.random.split(key, 4)

    # --- Test 1: module-consistent shapes (nb_scales=1, nb_hidden=32 -> C_in=32,
    #     nb_classes=4, spatial 16^3).  S=4096 fits one VMEM slab -> single
    #     reduction step, no padding, no masking.
    N, C_in, D, H, W, NB_CLASSES = 2, 32, 16, 16, 16, 4
    x = jax.random.normal(k1, (N, C_in, D, H, W), dtype=jnp.float32)
    w1, b1, w2, b2 = _make_params(k2, C_in, HIDDEN, NB_CLASSES)

    out = jax.block_until_ready(basic_fc_forward(x, w1, b1, w2, b2))
    ref = reference_forward(x, w1, b1, w2, b2)
    assert out.shape == (N, NB_CLASSES, 1, 1, 1), out.shape
    assert jnp.allclose(out, ref, atol=1e-4, rtol=1e-4), (
        float(jnp.max(jnp.abs(out - ref))))

    # --- Test 2: ragged-spatial path (S=343 not a multiple of the tile) with a
    #     deliberately tiny slab budget so the multi-step masked reduction runs.
    N2, C2, D2, NB2 = 3, 16, 7, 4
    x2 = jax.random.normal(k3, (N2, C2, D2, D2, D2), dtype=jnp.float32)
    w1b, b1b, w2b, b2b = _make_params(k4, C2, HIDDEN, NB2)

    out2 = jax.block_until_ready(
        basic_fc_forward(x2, w1b, b1b, w2b, b2b, max_slab_bytes=32 * 1024))
    ref2 = reference_forward(x2, w1b, b1b, w2b, b2b)
    assert out2.shape == (N2, NB2, 1, 1, 1), out2.shape
    assert jnp.allclose(out2, ref2, atol=1e-4, rtol=1e-4), (
        float(jnp.max(jnp.abs(out2 - ref2))))

    print("KERNEL_OK")
</pallas_src>

<mosaic_0001>
module attributes {stable_mosaic.version = 11 : i64} {
  func.func @_basic_fc_kernel(%arg0: i32, %arg1: i32, %arg2: memref<2x32x4096xf32, #tpu.memory_space<vmem>>, %arg3: memref<32x256xf32, #tpu.memory_space<vmem>>, %arg4: memref<1x256xf32, #tpu.memory_space<vmem>>, %arg5: memref<256x4xf32, #tpu.memory_space<vmem>>, %arg6: memref<1x4xf32, #tpu.memory_space<vmem>>, %arg7: memref<2x4xf32, #tpu.memory_space<vmem>>, %arg8: memref<2x32xf32, #tpu.memory_space<vmem>>) attributes {dimension_semantics = [#tpu.dimension_semantics<parallel>, #tpu.dimension_semantics<arbitrary>], iteration_bounds = array<i64: 1, 1>, scalar_prefetch = 0 : i64, scratch_operands = 1 : i64, tpu.core_type = #tpu.core_type<tc>, window_params = [{transform_indices = @transform_0, window_bounds = array<i64: 2, 32, 4096>}, {pipeline_mode = #tpu.pipeline_mode<synchronous>, transform_indices = @transform_1, window_bounds = array<i64: 32, 256>}, {pipeline_mode = #tpu.pipeline_mode<synchronous>, transform_indices = @transform_2, window_bounds = array<i64: 1, 256>}, {pipeline_mode = #tpu.pipeline_mode<synchronous>, transform_indices = @transform_3, window_bounds = array<i64: 256, 4>}, {pipeline_mode = #tpu.pipeline_mode<synchronous>, transform_indices = @transform_4, window_bounds = array<i64: 1, 4>}, {transform_indices = @transform_5, window_bounds = array<i64: 2, 4>}]} {
    %c0_i32 = arith.constant 0 : i32
    %0 = arith.cmpi eq, %arg1, %c0_i32 : i32
    %1 = arith.extui %0 : i1 to i32
    %c0_i32_0 = arith.constant 0 : i32
    %2 = arith.cmpi ne, %1, %c0_i32_0 : i32
    scf.if %2 {
      %cst_9 = arith.constant 0.000000e+00 : f32
      %11 = vector.broadcast %cst_9 : f32 to vector<2x32xf32>
      %c0_10 = arith.constant 0 : index
      %c0_11 = arith.constant 0 : index
      %12 = vector.load %arg8[%c0_10, %c0_11] : memref<2x32xf32, #tpu.memory_space<vmem>>, vector<2x32xf32>
      tpu.vector_store %arg8[%c0_10, %c0_11], %11 {strides = array<i32>} : memref<2x32xf32, #tpu.memory_space<vmem>>, vector<2x32xf32>,
    } else {
    }
    %c0 = arith.constant 0 : index
    %c0_1 = arith.constant 0 : index
    %c0_2 = arith.constant 0 : index
    %3 = vector.load %arg2[%c0, %c0_1, %c0_2] : memref<2x32x4096xf32, #tpu.memory_space<vmem>>, vector<2x32x4096xf32>
    %c0_3 = arith.constant 0 : index
    %c0_4 = arith.constant 0 : index
    %4 = vector.load %arg8[%c0_3, %c0_4] : memref<2x32xf32, #tpu.memory_space<vmem>>, vector<2x32xf32>
    %cst = arith.constant dense<0.000000e+00> : vector<2x32xf32>
    %5 = vector.multi_reduction <add>, %3, %cst [2] : vector<2x32x4096xf32> to vector<2x32xf32>
    %6 = arith.addf %4, %5 : vector<2x32xf32>
    %c0_5 = arith.constant 0 : index
    %c0_6 = arith.constant 0 : index
    %7 = vector.load %arg8[%c0_5, %c0_6] : memref<2x32xf32, #tpu.memory_space<vmem>>, vector<2x32xf32>
    tpu.vector_store %arg8[%c0_5, %c0_6], %6 {strides = array<i32>} : memref<2x32xf32, #tpu.memory_space<vmem>>, vector<2x32xf32>,
    %c0_i32_7 = arith.constant 0 : i32
    %8 = arith.cmpi eq, %arg1, %c0_i32_7 : i32
    %9 = arith.extui %8 : i1 to i32
    %c0_i32_8 = arith.constant 0 : i32
    %10 = arith.cmpi ne, %9, %c0_i32_8 : i32
    scf.if %10 {
      %c0_9 = arith.constant 0 : index
      %c0_10 = arith.constant 0 : index
      %11 = vector.load %arg8[%c0_9, %c0_10] : memref<2x32xf32, #tpu.memory_space<vmem>>, vector<2x32xf32>
      %cst_11 = arith.constant 2.44140625E-4 : f32
      %12 = vector.broadcast %cst_11 : f32 to vector<2x32xf32>
      %13 = arith.mulf %11, %12 : vector<2x32xf32>
      %c0_12 = arith.constant 0 : index
      %c0_13 = arith.constant 0 : index
      %14 = vector.load %arg3[%c0_12, %c0_13] : memref<32x256xf32, #tpu.memory_space<vmem>>, vector<32x256xf32>
      %cst_14 = arith.constant dense<0.000000e+00> : vector<2x256xf32>
      %15 = tpu.matmul %13, %14, %cst_14 {dimension_numbers = #tpu.dot_dimension_numbers<[1], [0], [0], [1], [0, 0, 1, 1], [], []>} : vector<2x32xf32>, vector<32x256xf32>, vector<2x256xf32> -> vector<2x256xf32>
      %c0_15 = arith.constant 0 : index
      %c0_16 = arith.constant 0 : index
      %16 = vector.load %arg4[%c0_15, %c0_16] : memref<1x256xf32, #tpu.memory_space<vmem>>, vector<1x256xf32>
      %17 = vector.broadcast %16 : vector<1x256xf32> to vector<2x256xf32>
      %18 = arith.addf %15, %17 : vector<2x256xf32>
      %cst_17 = arith.constant 0.000000e+00 : f32
      %19 = vector.broadcast %cst_17 : f32 to vector<2x256xf32>
      %20 = arith.maximumf %18, %19 : vector<2x256xf32>
      %c0_18 = arith.constant 0 : index
      %c0_19 = arith.constant 0 : index
      %21 = vector.load %arg5[%c0_18, %c0_19] : memref<256x4xf32, #tpu.memory_space<vmem>>, vector<256x4xf32>
      %cst_20 = arith.constant dense<0.000000e+00> : vector<2x4xf32>
      %22 = tpu.matmul %20, %21, %cst_20 {dimension_numbers = #tpu.dot_dimension_numbers<[1], [0], [0], [1], [0, 0, 1, 1], [], []>} : vector<2x256xf32>, vector<256x4xf32>, vector<2x4xf32> -> vector<2x4xf32>
      %c0_21 = arith.constant 0 : index
      %c0_22 = arith.constant 0 : index
      %23 = vector.load %arg6[%c0_21, %c0_22] : memref<1x4xf32, #tpu.memory_space<vmem>>, vector<1x4xf32>
      %24 = vector.broadcast %23 : vector<1x4xf32> to vector<2x4xf32>
      %25 = arith.addf %22, %24 : vector<2x4xf32>
      %cst_23 = arith.constant 0.000000e+00 : f32
      %26 = vector.broadcast %cst_23 : f32 to vector<2x4xf32>
      %27 = arith.maximumf %25, %26 : vector<2x4xf32>
      %c0_24 = arith.constant 0 : index
      %c0_25 = arith.constant 0 : index
      %28 = vector.load %arg7[%c0_24, %c0_25] : memref<2x4xf32, #tpu.memory_space<vmem>>, vector<2x4xf32>
      tpu.vector_store %arg7[%c0_24, %c0_25], %27 {strides = array<i32>} : memref<2x4xf32, #tpu.memory_space<vmem>>, vector<2x4xf32>,
    } else {
    }
    return
  }
  func.func @transform_0(%arg0: i32, %arg1: i32) -> (i32, i32, i32) {
    %c0_i32 = arith.constant 0 : i32
    %c0_i32_0 = arith.constant 0 : i32
    return %arg0, %c0_i32, %arg1 : i32, i32, i32
  }
  func.func @transform_1(%arg0: i32, %arg1: i32) -> (i32, i32) {
    %c0_i32 = arith.constant 0 : i32
    %c0_i32_0 = arith.constant 0 : i32
    %c0_i32_1 = arith.constant 0 : i32
    return %c0_i32, %c0_i32_0 : i32, i32
  }
  func.func @transform_2(%arg0: i32, %arg1: i32) -> (i32, i32) {
    %c0_i32 = arith.constant 0 : i32
    %c0_i32_0 = arith.constant 0 : i32
    %c0_i32_1 = arith.constant 0 : i32
    return %c0_i32, %c0_i32_0 : i32, i32
  }
  func.func @transform_3(%arg0: i32, %arg1: i32) -> (i32, i32) {
    %c0_i32 = arith.constant 0 : i32
    %c0_i32_0 = arith.constant 0 : i32
    %c0_i32_1 = arith.constant 0 : i32
    return %c0_i32, %c0_i32_0 : i32, i32
  }
  func.func @transform_4(%arg0: i32, %arg1: i32) -> (i32, i32) {
    %c0_i32 = arith.constant 0 : i32
    %c0_i32_0 = arith.constant 0 : i32
    %c0_i32_1 = arith.constant 0 : i32
    return %c0_i32, %c0_i32_0 : i32, i32
  }
  func.func @transform_5(%arg0: i32, %arg1: i32) -> (i32, i32) {
    %c0_i32 = arith.constant 0 : i32
    %c0_i32_0 = arith.constant 0 : i32
    return %arg0, %c0_i32 : i32, i32
  }
}

</mosaic_0001>

<bundles_post_ra>
// kernel: tpu_custom_call.1
= control target key start
LH: loop header
LB: loop body
LE: loop exit
PB: predicated region body
PF: predicated region fallthrough
CT: control target
= control target key end

     0   :  { %10 = vsyncpa [#allocation4], 0  ;;  %s999_s0 = inlined_call_operand.hbm [shape: f32[2,32,4096], index: 0, kind: input, shape index: {}]   ;;  %s1000_s1 = inlined_call_operand.vmem [shape: f32[32,256], index: 1, kind: input, shape index: {}]   ;;  %s1001_s2 = inlined_call_operand.vmem [shape: f32[1,256], index: 2, kind: input, shape index: {}]   ;;  %s1002_s3 = inlined_call_operand.vmem [shape: f32[256,4], index: 3, kind: input, shape index: {}]   ;;  %s1003_s4 = inlined_call_operand.vmem [shape: f32[1,4], index: 4, kind: input, shape index: {}]   ;;  %s1004_s5 = inlined_call_operand.hbm [shape: f32[2,4], index: 5, kind: output, shape index: {}]  }
   0x1   :  { %11 = vsyncpa [#allocation5], 0  ;;  %s16_s20 = sshll.u32 %s999_s0, 4  ;;  %s821_s21 = smov [#allocation3]   ;;  %s17_s20 = int_to_ptr.hbm [resolvable:$true] %s16_s20 }
   0x2   :  { %s18_s22 = sshll.u32 %s821_s21, 4  ;;  %s822_s23 = smov 4096   ;;  %s19_s22 = int_to_ptr.vmem [resolvable:$true] %s18_s22 }
   0x3   :  { %s823_s24 = smov 256  }
   0x4   :  { %24 = dma.hbm_to_vmem [thread:$0]  %s17_s20, 32768, %s19_s22, [#allocation4], %s822_s23, %s822_s23, %s823_s24  }
   0x5   :  { %817 = dma.done.wait [#allocation4], 32768  }
   0x6   :  { %818 = vsyncadd [#allocation4], 4294934528  ;;  %v171_v0 = vld [vmem:[#allocation3 + $0x400] sm:$0xff]  ;;  %v172_v1 = vld [vmem:[#allocation3 + $0x408] sm:$0xff]  ;;  %vm41_vm0 = vcmask 254976   ;;  %vm577_vm1 = vcmask 130112  }
   0x7   :  { %v173_v2 = vld [vmem:[#allocation3 + $0x410] sm:$0xff]  ;;  %v432_v3 = vadd.f32 %v172_v1, %v171_v0  ;;  %v174_v4 = vld [vmem:[#allocation3 + $0x418] sm:$0xff]  ;;  %v175_v6 = vld [vmem:[#allocation3 + $0x420] sm:$0xff]  ;;  %vm581_vm2 = vcmask 195712   ;;  %vm585_vm3 = vcmask 261312   ;;  %vm594_vm4 = vcmask 1041409  }
   0x8   :  { %v176_v8 = vld [vmem:[#allocation3 + $0x428] sm:$0xff]  ;;  %v177_v10 = vld [vmem:[#allocation3 + $0x430] sm:$0xff]  ;;  %v178_v12 = vld [vmem:[#allocation3 + $0x438] sm:$0xff]  ;;  %vm619_vm5 = vcmask 261120   ;;  %s751_s29 = sshll.u32 %s1004_s5, 4  ;;  %vm742_vm6 = vcmask 25600   ;;  %s752_s29 = int_to_ptr.hbm [resolvable:$true] %s751_s29 }
   0x9   :  { %v433_v5 = vadd.f32 %v432_v3, %v173_v2  ;;  %v43_v13 = vld [vmem:[#allocation3] sm:$0xff]  ;;  %v44_v15 = vld [vmem:[#allocation3 + $0x8] sm:$0xff]  ;;  %v45_v16 = vld [vmem:[#allocation3 + $0x10] sm:$0xff] }
   0xa   :  { %v179_v17 = vld [vmem:[#allocation3 + $0x440] sm:$0xff]  ;;  %v300_v18 = vadd.f32 %v44_v15, %v43_v13  ;;  %v46_v20 = vld [vmem:[#allocation3 + $0x18] sm:$0xff]  ;;  %v180_v21 = vld [vmem:[#allocation3 + $0x448] sm:$0xff] }
   0xb   :  { %v434_v7 = vadd.f32 %v433_v5, %v174_v4  ;;  %v47_v24 = vld [vmem:[#allocation3 + $0x20] sm:$0xff]  ;;  %v181_v25 = vld [vmem:[#allocation3 + $0x450] sm:$0xff]  ;;  %v48_v28 = vld [vmem:[#allocation3 + $0x28] sm:$0xff] }
   0xc   :  { %v301_v22 = vadd.f32 %v300_v18, %v45_v16  ;;  %v107_v29 = vld [vmem:[#allocation3 + $0x200] sm:$0xff]  ;;  %v182_v30 = vld [vmem:[#allocation3 + $0x458] sm:$0xff]  ;;  %v108_v32 = vld [vmem:[#allocation3 + $0x208] sm:$0xff] }
   0xd   :  { %v435_v9 = vadd.f32 %v434_v7, %v175_v6  ;;  %v109_v33 = vld [vmem:[#allocation3 + $0x210] sm:$0xff]  ;;  %v366_v36 = vadd.f32 %v108_v32, %v107_v29  ;;  %v183_v37 = vld [vmem:[#allocation3 + $0x460] sm:$0xff]  ;;  %v110_v39 = vld [vmem:[#allocation3 + $0x218] sm:$0xff] }
   0xe   :  { %v302_v26 = vadd.f32 %v301_v22, %v46_v20  ;;  %v49_v35 = vld [vmem:[#allocation3 + $0x30] sm:$0xff]  ;;  %v50_v41 = vld [vmem:[#allocation3 + $0x38] sm:$0xff]  ;;  %v184_v43 = vld [vmem:[#allocation3 + $0x468] sm:$0xff] }
   0xf   :  { %v436_v11 = vadd.f32 %v435_v9, %v176_v8  ;;  %v367_v42 = vadd.f32 %v366_v36, %v109_v33  ;;  %v111_v45 = vld [vmem:[#allocation3 + $0x220] sm:$0xff]  ;;  %v185_v49 = vld [vmem:[#allocation3 + $0x470] sm:$0xff]  ;;  %v112_v51 = vld [vmem:[#allocation3 + $0x228] sm:$0xff] }
  0x10   :  { %v303_v31 = vadd.f32 %v302_v26, %v47_v24  ;;  %v51_v47 = vld [vmem:[#allocation3 + $0x40] sm:$0xff]  ;;  %v186_v52 = vld [vmem:[#allocation3 + $0x478] sm:$0xff]  ;;  %v52_v54 = vld [vmem:[#allocation3 + $0x48] sm:$0xff] }
  0x11   :  { %v437_v14 = vadd.f32 %v436_v11, %v177_v10  ;;  %v368_v48 = vadd.f32 %v367_v42, %v110_v39  ;;  %v113_v57 = vld [vmem:[#allocation3 + $0x230] sm:$0xff]  ;;  %v203_v58 = vld [vmem:[#allocation3 + $0x500] sm:$0xff]  ;;  %v204_v59 = vld [vmem:[#allocation3 + $0x508] sm:$0xff] }
  0x12   :  { %v304_v38 = vadd.f32 %v303_v31, %v48_v28  ;;  %v53_v61 = vld [vmem:[#allocation3 + $0x50] sm:$0xff]  ;;  %v465_v0 = vadd.f32 %v204_v59, %v203_v58  ;;  %v187_v1 = vld [vmem:[#allocation3 + $0x480] sm:$0xff]  ;;  %v114_v3 = vld [vmem:[#allocation3 + $0x238] sm:$0xff] }
  0x13   :  { %v438_v19 = vadd.f32 %v437_v14, %v178_v12  ;;  %v369_v55 = vadd.f32 %v368_v48, %v111_v45  ;;  %v205_v63 = vld [vmem:[#allocation3 + $0x510] sm:$0xff]  ;;  %v206_v4 = vld [vmem:[#allocation3 + $0x518] sm:$0xff]  ;;  %v188_v9 = vld [vmem:[#allocation3 + $0x488] sm:$0xff] }
  0x14   :  { %v305_v44 = vadd.f32 %v304_v38, %v49_v35  ;;  %v54_v6 = vld [vmem:[#allocation3 + $0x58] sm:$0xff]  ;;  %v466_v8 = vadd.f32 %v465_v0, %v205_v63  ;;  %v115_v11 = vld [vmem:[#allocation3 + $0x240] sm:$0xff]  ;;  %v208_v20 = vld [vmem:[#allocation3 + $0x528] sm:$0xff] }
  0x15   :  { %v439_v23 = vadd.f32 %v438_v19, %v179_v17  ;;  %v370_v62 = vadd.f32 %v369_v55, %v112_v51  ;;  %v207_v12 = vld [vmem:[#allocation3 + $0x520] sm:$0xff]  ;;  %v189_v17 = vld [vmem:[#allocation3 + $0x490] sm:$0xff]  ;;  %v116_v19 = vld [vmem:[#allocation3 + $0x248] sm:$0xff] }
  0x16   :  { %v306_v50 = vadd.f32 %v305_v44, %v50_v41  ;;  %v55_v14 = vld [vmem:[#allocation3 + $0x60] sm:$0xff]  ;;  %v467_v16 = vadd.f32 %v466_v8, %v206_v4  ;;  %v56_v22 = vld [vmem:[#allocation3 + $0x68] sm:$0xff]  ;;  %v209_v28 = vld [vmem:[#allocation3 + $0x530] sm:$0xff] }
  0x17   :  { %v440_v27 = vadd.f32 %v439_v23, %v180_v21  ;;  %v371_v7 = vadd.f32 %v370_v62, %v113_v57  ;;  %v191_v33 = vld [vmem:[#allocation3 + $0x4a0] sm:$0xff]  ;;  %v118_v35 = vld [vmem:[#allocation3 + $0x258] sm:$0xff]  ;;  %v77_v51 = vld [vmem:[#allocation3 + $0x110] sm:$0xff] }
  0x18   :  { %v307_v56 = vadd.f32 %v306_v50, %v51_v47  ;;  %v468_v24 = vadd.f32 %v467_v16, %v207_v12  ;;  %v210_v36 = vld [vmem:[#allocation3 + $0x538] sm:$0xff]  ;;  %v211_v44 = vld [vmem:[#allocation3 + $0x540] sm:$0xff]  ;;  %v76_v50 = vld [vmem:[#allocation3 + $0x108] sm:$0xff] }
  0x19   :  { %v441_v34 = vadd.f32 %v440_v27, %v181_v25  ;;  %v372_v15 = vadd.f32 %v371_v7, %v114_v3  ;;  %v190_v25 = vld [vmem:[#allocation3 + $0x498] sm:$0xff]  ;;  %v117_v27 = vld [vmem:[#allocation3 + $0x250] sm:$0xff]  ;;  %v75_v45 = vld [vmem:[#allocation3 + $0x100] sm:$0xff] }
  0x1a   :  { %v308_v2 = vadd.f32 %v307_v56, %v52_v54  ;;  %v469_v32 = vadd.f32 %v468_v24, %v208_v20  ;;  %v58_v39 = vld [vmem:[#allocation3 + $0x78] sm:$0xff]  ;;  %v59_v47 = vld [vmem:[#allocation3 + $0x80] sm:$0xff]  ;;  %v120_v54 = vld [vmem:[#allocation3 + $0x268] sm:$0xff]  ;;  %v333_v56 = vadd.f32 %v76_v50, %v75_v45 }
  0x1b   :  { %v442_v40 = vadd.f32 %v441_v34, %v182_v30  ;;  %v373_v23 = vadd.f32 %v372_v15, %v115_v11  ;;  %v57_v30 = vld [vmem:[#allocation3 + $0x70] sm:$0xff]  ;;  %v212_v55 = vld [vmem:[#allocation3 + $0x548] sm:$0xff]  ;;  %v194_v62 = vld [vmem:[#allocation3 + $0x4b8] sm:$0xff] }
  0x1c   :  { %v309_v10 = vadd.f32 %v308_v2, %v53_v61  ;;  %v470_v41 = vadd.f32 %v469_v32, %v209_v28  ;;  %v60_v58 = vld [vmem:[#allocation3 + $0x88] sm:$0xff]  ;;  %v78_v61 = vld [vmem:[#allocation3 + $0x118] sm:$0xff]  ;;  %v121_v0 = vld [vmem:[#allocation3 + $0x270] sm:$0xff]  ;;  %v334_v2 = vadd.f32 %v333_v56, %v77_v51 }
  0x1d   :  { %v443_v46 = vadd.f32 %v442_v40, %v183_v37  ;;  %v374_v31 = vadd.f32 %v373_v23, %v116_v19  ;;  %v192_v37 = vld [vmem:[#allocation3 + $0x4a8] sm:$0xff]  ;;  %v61_v4 = vld [vmem:[#allocation3 + $0x90] sm:$0xff]  ;;  %v79_v7 = vld [vmem:[#allocation3 + $0x120] sm:$0xff] }
  0x1e   :  { %v310_v18 = vadd.f32 %v309_v10, %v54_v6  ;;  %v195_v8 = vld [vmem:[#allocation3 + $0x4c0] sm:$0xff]  ;;  %v122_v10 = vld [vmem:[#allocation3 + $0x278] sm:$0xff]  ;;  %v335_v12 = vadd.f32 %v334_v2, %v78_v61  ;;  %v197_v23 = vld [vmem:[#allocation3 + $0x4d0] sm:$0xff] }
  0x1f   :  { %v444_v53 = vadd.f32 %v443_v46, %v184_v43  ;;  %v375_v40 = vadd.f32 %v374_v31, %v117_v27  ;;  %v119_v43 = vld [vmem:[#allocation3 + $0x260] sm:$0xff]  ;;  %v214_v11 = vld [vmem:[#allocation3 + $0x558] sm:$0xff]  ;;  %v81_v28 = vld [vmem:[#allocation3 + $0x130] sm:$0xff] }
  0x20   :  { %v311_v26 = vadd.f32 %v310_v18, %v55_v14  ;;  %v62_v14 = vld [vmem:[#allocation3 + $0x98] sm:$0xff]  ;;  %v196_v18 = vld [vmem:[#allocation3 + $0x4c8] sm:$0xff]  ;;  %v123_v20 = vld [vmem:[#allocation3 + $0x280] sm:$0xff] }
  0x21   :  { %v445_v60 = vadd.f32 %v444_v53, %v185_v49  ;;  %v376_v48 = vadd.f32 %v375_v40, %v118_v35  ;;  %v471_v49 = vadd.f32 %v470_v41, %v210_v36  ;;  %v124_v31 = vld [vmem:[#allocation3 + $0x288] sm:$0xff]  ;;  %v125_v36 = vld [vmem:[#allocation3 + $0x290] sm:$0xff]  ;;  %v199_v40 = vld [vmem:[#allocation3 + $0x4e0] sm:$0xff] }
  0x22   :  { %v312_v34 = vadd.f32 %v311_v26, %v56_v22  ;;  %v336_v22 = vadd.f32 %v335_v12, %v79_v7  ;;  %v216_v32 = vld [vmem:[#allocation3 + $0x568] sm:$0xff]  ;;  %v83_v50 = vld [vmem:[#allocation3 + $0x140] sm:$0xff]  ;;  %v237_v51 = vld [vmem:[#allocation3 + $0x610] sm:$0xff] }
  0x23   :  { %v446_v5 = vadd.f32 %v445_v60, %v186_v52  ;;  %v193_v52 = vld [vmem:[#allocation3 + $0x4b0] sm:$0xff]  ;;  %v377_v59 = vadd.f32 %v376_v48, %v119_v43  ;;  %v472_v60 = vadd.f32 %v471_v49, %v211_v44  ;;  %v64_v35 = vld [vmem:[#allocation3 + $0xa8] sm:$0xff]  ;;  %v235_v44 = vld [vmem:[#allocation3 + $0x600] sm:$0xff] }
  0x24   :  { %v313_v42 = vadd.f32 %v312_v34, %v57_v30  ;;  %v236_v45 = vld [vmem:[#allocation3 + $0x608] sm:$0xff]  ;;  %v127_v2 = vld [vmem:[#allocation3 + $0x2a0] sm:$0xff] }
  0x25   :  { %v447_v13 = vadd.f32 %v446_v5, %v187_v1  ;;  %v213_v1 = vld [vmem:[#allocation3 + $0x550] sm:$0xff]  ;;  %v378_v5 = vadd.f32 %v377_v59, %v120_v54  ;;  %v473_v6 = vadd.f32 %v472_v60, %v212_v55  ;;  %v126_v54 = vld [vmem:[#allocation3 + $0x298] sm:$0xff] }
  0x26   :  { %v314_v53 = vadd.f32 %v313_v42, %v58_v39  ;;  %v82_v39 = vld [vmem:[#allocation3 + $0x138] sm:$0xff]  ;;  %v217_v42 = vld [vmem:[#allocation3 + $0x570] sm:$0xff] }
  0x27   :  { %v448_v21 = vadd.f32 %v447_v13, %v188_v9  ;;  %v379_v15 = vadd.f32 %v378_v5, %v121_v0  ;;  %v474_v16 = vadd.f32 %v473_v6, %v213_v1  ;;  %v218_v55 = vld [vmem:[#allocation3 + $0x578] sm:$0xff]  ;;  %v239_v5 = vld [vmem:[#allocation3 + $0x620] sm:$0xff]  ;;  %v201_v6 = vld [vmem:[#allocation3 + $0x4f0] sm:$0xff] }
  0x28   :  { %v315_v63 = vadd.f32 %v314_v53, %v59_v47  ;;  %v65_v47 = vld [vmem:[#allocation3 + $0xb0] sm:$0xff]  ;;  %v66_v60 = vld [vmem:[#allocation3 + $0xb8] sm:$0xff] }
  0x29   :  { %v449_v29 = vadd.f32 %v448_v21, %v189_v17  ;;  %v80_v17 = vld [vmem:[#allocation3 + $0x128] sm:$0xff]  ;;  %v215_v21 = vld [vmem:[#allocation3 + $0x560] sm:$0xff]  ;;  %v380_v26 = vadd.f32 %v379_v15, %v122_v10  ;;  %v475_v27 = vadd.f32 %v474_v16, %v214_v11  ;;  %v85_v11 = vld [vmem:[#allocation3 + $0x150] sm:$0xff] }
  0x2a   :  { %v316_v9 = vadd.f32 %v315_v63, %v60_v58  ;;  %v200_v58 = vld [vmem:[#allocation3 + $0x4e8] sm:$0xff] }
  0x2b   :  { %v450_v38 = vadd.f32 %v449_v29, %v190_v25  ;;  %v63_v25 = vld [vmem:[#allocation3 + $0xa0] sm:$0xff]  ;;  %v198_v29 = vld [vmem:[#allocation3 + $0x4d8] sm:$0xff]  ;;  %v84_v63 = vld [vmem:[#allocation3 + $0x148] sm:$0xff] }
  0x2c   :  { %v317_v19 = vadd.f32 %v316_v9, %v61_v4  ;;  %v128_v15 = vld [vmem:[#allocation3 + $0x2a8] sm:$0xff] }
  0x2d   :  { %v451_v46 = vadd.f32 %v450_v38, %v191_v33  ;;  %v337_v33 = vadd.f32 %v336_v22, %v80_v17  ;;  %v476_v38 = vadd.f32 %v475_v27, %v215_v21  ;;  %v220_v16 = vld [vmem:[#allocation3 + $0x588] sm:$0xff]  ;;  %v129_v21 = vld [vmem:[#allocation3 + $0x2b0] sm:$0xff] }
  0x2e   :  { %v318_v30 = vadd.f32 %v317_v19, %v62_v14 }
  0x2f   :  { %v452_v57 = vadd.f32 %v451_v46, %v192_v37  ;;  %v381_v37 = vadd.f32 %v380_v26, %v123_v20  ;;  %v338_v43 = vadd.f32 %v337_v33, %v81_v28  ;;  %v477_v49 = vadd.f32 %v476_v38, %v216_v32  ;;  %v68_v20 = vld [vmem:[#allocation3 + $0xc8] sm:$0xff]  ;;  %v69_v26 = vld [vmem:[#allocation3 + $0xd0] sm:$0xff]  ;;  %v70_v32 = vld [vmem:[#allocation3 + $0xd8] sm:$0xff] }
  0x30   :  { %v319_v41 = vadd.f32 %v318_v30, %v63_v25  ;;  %v221_v28 = vld [vmem:[#allocation3 + $0x590] sm:$0xff]  ;;  %v130_v33 = vld [vmem:[#allocation3 + $0x2b8] sm:$0xff] }
  0x31   :  { %v453_v3 = vadd.f32 %v452_v57, %v193_v52  ;;  %v382_v48 = vadd.f32 %v381_v37, %v124_v31  ;;  %v498_v52 = vadd.f32 %v236_v45, %v235_v44  ;;  %v339_v56 = vadd.f32 %v338_v43, %v82_v39  ;;  %v238_v57 = vld [vmem:[#allocation3 + $0x618] sm:$0xff]  ;;  %v241_v30 = vld [vmem:[#allocation3 + $0x630] sm:$0xff]  ;;  %v71_v44 = vld [vmem:[#allocation3 + $0xe0] sm:$0xff] }
  0x32   :  { %v320_v53 = vadd.f32 %v319_v41, %v64_v35  ;;  %v222_v39 = vld [vmem:[#allocation3 + $0x598] sm:$0xff] }
  0x33   :  { %v454_v13 = vadd.f32 %v453_v3, %v194_v62  ;;  %v383_v61 = vadd.f32 %v382_v48, %v125_v36  ;;  %v478_v62 = vadd.f32 %v477_v49, %v217_v42  ;;  %v499_v0 = vadd.f32 %v498_v52, %v237_v51  ;;  %v219_v3 = vld [vmem:[#allocation3 + $0x580] sm:$0xff]  ;;  %v242_v42 = vld [vmem:[#allocation3 + $0x638] sm:$0xff]  ;;  %v268_v49 = vld [vmem:[#allocation3 + $0x708] sm:$0xff] }
  0x34   :  { %v321_v1 = vadd.f32 %v320_v53, %v65_v47  ;;  %v340_v4 = vadd.f32 %v339_v56, %v83_v50  ;;  %v87_v36 = vld [vmem:[#allocation3 + $0x160] sm:$0xff]  ;;  %v269_v50 = vld [vmem:[#allocation3 + $0x710] sm:$0xff] }
  0x35   :  { %v455_v24 = vadd.f32 %v454_v13, %v195_v8  ;;  %v67_v8 = vld [vmem:[#allocation3 + $0xc0] sm:$0xff]  ;;  %v384_v9 = vadd.f32 %v383_v61, %v126_v54  ;;  %v479_v10 = vadd.f32 %v478_v62, %v218_v55  ;;  %v500_v12 = vadd.f32 %v499_v0, %v238_v57  ;;  %v202_v13 = vld [vmem:[#allocation3 + $0x4f8] sm:$0xff]  ;;  %v72_v57 = vld [vmem:[#allocation3 + $0xe8] sm:$0xff] }
  0x36   :  { %v322_v14 = vadd.f32 %v321_v1, %v66_v60  ;;  %v341_v17 = vadd.f32 %v340_v4, %v84_v63  ;;  %v267_v48 = vld [vmem:[#allocation3 + $0x700] sm:$0xff]  ;;  %v89_v60 = vld [vmem:[#allocation3 + $0x170] sm:$0xff]  ;;  %v270_v62 = vld [vmem:[#allocation3 + $0x718] sm:$0xff] }
  0x37   :  { %v456_v34 = vadd.f32 %v455_v24, %v196_v18  ;;  %v240_v18 = vld [vmem:[#allocation3 + $0x628] sm:$0xff]  ;;  %v385_v22 = vadd.f32 %v384_v9, %v127_v2  ;;  %v86_v24 = vld [vmem:[#allocation3 + $0x158] sm:$0xff]  ;;  %v501_v25 = vadd.f32 %v500_v12, %v239_v5  ;;  %v131_v52 = vld [vmem:[#allocation3 + $0x2c0] sm:$0xff]  ;;  %v531_v56 = vadd.f32 %v268_v49, %v267_v48 }
  0x38   :  { %v323_v27 = vadd.f32 %v322_v14, %v67_v8  ;;  %v223_v53 = vld [vmem:[#allocation3 + $0x5a0] sm:$0xff]  ;;  %v132_v0 = vld [vmem:[#allocation3 + $0x2c8] sm:$0xff]  ;;  %v73_v5 = vld [vmem:[#allocation3 + $0xf0] sm:$0xff] }
  0x39   :  { %v457_v46 = vadd.f32 %v456_v34, %v197_v23  ;;  %v480_v23 = vadd.f32 %v479_v10, %v219_v3  ;;  %v386_v34 = vadd.f32 %v385_v22, %v128_v15  ;;  %v502_v37 = vadd.f32 %v501_v25, %v240_v18  ;;  %v243_v55 = vld [vmem:[#allocation3 + $0x640] sm:$0xff]  ;;  %v224_v1 = vld [vmem:[#allocation3 + $0x5a8] sm:$0xff]  ;;  %v90_v8 = vld [vmem:[#allocation3 + $0x178] sm:$0xff] }
  0x3a   :  { %v324_v38 = vadd.f32 %v323_v27, %v68_v20  ;;  %v244_v3 = vld [vmem:[#allocation3 + $0x648] sm:$0xff]  ;;  %v532_v4 = vadd.f32 %v531_v56, %v269_v50  ;;  %v271_v10 = vld [vmem:[#allocation3 + $0x720] sm:$0xff]  ;;  %v133_v12 = vld [vmem:[#allocation3 + $0x2d0] sm:$0xff] }
  0x3b   :  { %v458_v59 = vadd.f32 %v457_v46, %v198_v29  ;;  %v342_v29 = vadd.f32 %v341_v17, %v85_v11  ;;  %v481_v35 = vadd.f32 %v480_v23, %v220_v16  ;;  %v387_v45 = vadd.f32 %v386_v34, %v129_v21  ;;  %v245_v15 = vld [vmem:[#allocation3 + $0x650] sm:$0xff]  ;;  %v74_v17 = vld [vmem:[#allocation3 + $0xf8] sm:$0xff]  ;;  %v91_v21 = vld [vmem:[#allocation3 + $0x180] sm:$0xff] }
  0x3c   :  { %v503_v47 = vadd.f32 %v502_v37, %v241_v30  ;;  %v325_v51 = vadd.f32 %v324_v38, %v69_v26  ;;  %v533_v16 = vadd.f32 %v532_v4, %v270_v62  ;;  %v134_v18 = vld [vmem:[#allocation3 + $0x2d8] sm:$0xff]  ;;  %v272_v23 = vld [vmem:[#allocation3 + $0x728] sm:$0xff]  ;;  %v135_v25 = vld [vmem:[#allocation3 + $0x2e0] sm:$0xff] }
  0x3d   :  { %v459_v7 = vadd.f32 %v458_v59, %v199_v40  ;;  %v88_v40 = vld [vmem:[#allocation3 + $0x168] sm:$0xff]  ;;  %v343_v41 = vadd.f32 %v342_v29, %v86_v24  ;;  %v482_v46 = vadd.f32 %v481_v35, %v221_v28  ;;  %v226_v26 = vld [vmem:[#allocation3 + $0x5b8] sm:$0xff]  ;;  %v273_v35 = vld [vmem:[#allocation3 + $0x730] sm:$0xff] }
  0x3e   :  { %v504_v61 = vadd.f32 %v503_v47, %v242_v42  ;;  %v326_v63 = vadd.f32 %v325_v51, %v70_v32  ;;  %v246_v28 = vld [vmem:[#allocation3 + $0x658] sm:$0xff]  ;;  %v534_v29 = vadd.f32 %v533_v16, %v271_v10  ;;  %v136_v37 = vld [vmem:[#allocation3 + $0x2e8] sm:$0xff] }
  0x3f   :  { %v460_v19 = vadd.f32 %v459_v7, %v200_v58  ;;  %v344_v54 = vadd.f32 %v343_v41, %v87_v36  ;;  %v388_v58 = vadd.f32 %v387_v45, %v130_v33  ;;  %v483_v59 = vadd.f32 %v482_v46, %v222_v39  ;;  %v92_v33 = vld [vmem:[#allocation3 + $0x188] sm:$0xff]  ;;  %v247_v39 = vld [vmem:[#allocation3 + $0x660] sm:$0xff]  ;;  %v93_v45 = vld [vmem:[#allocation3 + $0x190] sm:$0xff] }
  0x40   :  { %v505_v9 = vadd.f32 %v504_v61, %v243_v55  ;;  %v327_v11 = vadd.f32 %v326_v63, %v71_v44  ;;  %v139_v41 = vld [vmem:[#allocation3 + $0x300] sm:$0xff]  ;;  %v274_v47 = vld [vmem:[#allocation3 + $0x738] sm:$0xff]  ;;  %v248_v50 = vld [vmem:[#allocation3 + $0x668] sm:$0xff] }
  0x41   :  { %v461_v31 = vadd.f32 %v460_v19, %v201_v6  ;;  %v345_v2 = vadd.f32 %v344_v54, %v88_v40  ;;  %v389_v6 = vadd.f32 %v388_v58, %v131_v52  ;;  %v484_v7 = vadd.f32 %v483_v59, %v223_v53  ;;  %v140_v52 = vld [vmem:[#allocation3 + $0x308] sm:$0xff]  ;;  %v141_v53 = vld [vmem:[#allocation3 + $0x310] sm:$0xff]  ;;  %v275_v59 = vld [vmem:[#allocation3 + $0x740] sm:$0xff] }
  0x42   :  { %v506_v22 = vadd.f32 %v505_v9, %v244_v3  ;;  %v328_v24 = vadd.f32 %v327_v11, %v72_v57  ;;  %v535_v40 = vadd.f32 %v534_v29, %v272_v23  ;;  %v137_v54 = vld [vmem:[#allocation3 + $0x2f0] sm:$0xff]  ;;  %v94_v57 = vld [vmem:[#allocation3 + $0x198] sm:$0xff]  ;;  %v96_v16 = vld [vmem:[#allocation3 + $0x1a8] sm:$0xff] }
  0x43   :  { %v462_v43 = vadd.f32 %v461_v31, %v202_v13  ;;  %v225_v13 = vld [vmem:[#allocation3 + $0x5b0] sm:$0xff]  ;;  %v346_v14 = vadd.f32 %v345_v2, %v89_v60  ;;  %v390_v19 = vadd.f32 %v389_v6, %v132_v0  ;;  %v485_v20 = vadd.f32 %v484_v7, %v224_v1  ;;  %v227_v31 = vld [vmem:[#allocation3 + $0x5c0] sm:$0xff]  ;;  %v142_v1 = vld [vmem:[#allocation3 + $0x318] sm:$0xff] }
  0x44   :  { %v507_v34 = vadd.f32 %v506_v22, %v245_v15  ;;  %v329_v36 = vadd.f32 %v328_v24, %v73_v5  ;;  %v536_v51 = vadd.f32 %v535_v40, %v273_v35  ;;  %v399_v60 = vadd.f32 %v140_v52, %v139_v41  ;;  %v229_v61 = vld [vmem:[#allocation3 + $0x5d0] sm:$0xff]  ;;  %v138_v2 = vld [vmem:[#allocation3 + $0x2f8] sm:$0xff]  ;;  %v95_v5 = vld [vmem:[#allocation3 + $0x1a0] sm:$0xff] }
  0x45   :  { %463 = vadd.xlane.f32.xlu1 %v462_v43  ;;  %v347_v27 = vadd.f32 %v346_v14, %v90_v8  ;;  %v391_v30 = vadd.f32 %v390_v19, %v133_v12  ;;  %v486_v32 = vadd.f32 %v485_v20, %v225_v13  ;;  %v228_v43 = vld [vmem:[#allocation3 + $0x5c8] sm:$0xff]  ;;  %v249_v63 = vld [vmem:[#allocation3 + $0x670] sm:$0xff]  ;;  %v230_v9 = vld [vmem:[#allocation3 + $0x5d8] sm:$0xff] }
  0x46   :  { %v508_v46 = vadd.f32 %v507_v34, %v246_v28  ;;  %v330_v48 = vadd.f32 %v329_v36, %v74_v17  ;;  %v537_v0 = vadd.f32 %v536_v51, %v274_v47  ;;  %v276_v7 = vld [vmem:[#allocation3 + $0x748] sm:$0xff]  ;;  %v400_v8 = vadd.f32 %v399_v60, %v141_v53  ;;  %v250_v11 = vld [vmem:[#allocation3 + $0x678] sm:$0xff]  ;;  %v143_v13 = vld [vmem:[#allocation3 + $0x320] sm:$0xff] }
  0x47   :  { %v348_v38 = vadd.f32 %v347_v27, %v91_v21  ;;  %v392_v42 = vadd.f32 %v391_v30, %v134_v18  ;;  %v487_v44 = vadd.f32 %v486_v32, %v226_v26  ;;  %v277_v18 = vld [vmem:[#allocation3 + $0x750] sm:$0xff]  ;;  %v231_v20 = vld [vmem:[#allocation3 + $0x5e0] sm:$0xff]  ;;  %v144_v24 = vld [vmem:[#allocation3 + $0x328] sm:$0xff] }
  0x48   :  { %v509_v58 = vadd.f32 %v508_v46, %v247_v39  ;;  %331 = vadd.xlane.f32.xlu0 %v330_v48  ;;  %v538_v12 = vadd.f32 %v537_v0, %v275_v59  ;;  %v401_v19 = vadd.f32 %v400_v8, %v142_v1  ;;  %v251_v22 = vld [vmem:[#allocation3 + $0x680] sm:$0xff]  ;;  %v232_v26 = vld [vmem:[#allocation3 + $0x5e8] sm:$0xff]  ;;  %v97_v28 = vld [vmem:[#allocation3 + $0x1b0] sm:$0xff] }
  0x49   :  { %v349_v49 = vadd.f32 %v348_v38, %v92_v33  ;;  %v393_v55 = vadd.f32 %v392_v42, %v135_v25  ;;  %v488_v56 = vadd.f32 %v487_v44, %v227_v31  ;;  %v278_v30 = vld [vmem:[#allocation3 + $0x758] sm:$0xff]  ;;  %v252_v33 = vld [vmem:[#allocation3 + $0x688] sm:$0xff]  ;;  %v145_v35 = vld [vmem:[#allocation3 + $0x330] sm:$0xff] }
  0x4a   :  { %v510_v6 = vadd.f32 %v509_v58, %v248_v50  ;;  %v539_v23 = vadd.f32 %v538_v12, %v276_v7  ;;  %v402_v31 = vadd.f32 %v401_v19, %v143_v13  ;;  %v279_v39 = vld [vmem:[#allocation3 + $0x760] sm:$0xff]  ;;  %v233_v41 = vld [vmem:[#allocation3 + $0x5f0] sm:$0xff]  ;;  %v234_v51 = vld [vmem:[#allocation3 + $0x5f8] sm:$0xff] }
  0x4b   :  { %v350_v62 = vadd.f32 %v349_v49, %v93_v45  ;;  %v394_v3 = vadd.f32 %v393_v55, %v136_v37  ;;  %v489_v4 = vadd.f32 %v488_v56, %v228_v43  ;;  %v98_v37 = vld [vmem:[#allocation3 + $0x1b8] sm:$0xff]  ;;  %v253_v43 = vld [vmem:[#allocation3 + $0x690] sm:$0xff]  ;;  %v99_v47 = vld [vmem:[#allocation3 + $0x1c0] sm:$0xff] }
  0x4c   :  { %v511_v17 = vadd.f32 %v510_v6, %v249_v63  ;;  %v540_v34 = vadd.f32 %v539_v23, %v277_v18  ;;  %v403_v40 = vadd.f32 %v402_v31, %v144_v24  ;;  %v146_v45 = vld [vmem:[#allocation3 + $0x338] sm:$0xff]  ;;  %v280_v49 = vld [vmem:[#allocation3 + $0x768] sm:$0xff]  ;;  %v147_v55 = vld [vmem:[#allocation3 + $0x340] sm:$0xff] }
  0x4d   :  { %v351_v10 = vadd.f32 %v350_v62, %v94_v57  ;;  %v395_v14 = vadd.f32 %v394_v3, %v137_v54  ;;  %v490_v15 = vadd.f32 %v489_v4, %v229_v61  ;;  %v254_v53 = vld [vmem:[#allocation3 + $0x698] sm:$0xff]  ;;  %v100_v57 = vld [vmem:[#allocation3 + $0x1c8] sm:$0xff]  ;;  %v281_v59 = vld [vmem:[#allocation3 + $0x770] sm:$0xff] }
  0x4e   :  { %v512_v29 = vadd.f32 %v511_v17, %v250_v11  ;;  %v541_v44 = vadd.f32 %v540_v34, %v278_v30  ;;  %v404_v50 = vadd.f32 %v403_v40, %v145_v35  ;;  %v255_v62 = vld [vmem:[#allocation3 + $0x6a0] sm:$0xff]  ;;  %v148_v0 = vld [vmem:[#allocation3 + $0x348] sm:$0xff]  ;;  %v282_v4 = vld [vmem:[#allocation3 + $0x778] sm:$0xff] }
  0x4f   :  { %v352_v21 = vadd.f32 %v351_v10, %v95_v5  ;;  %v396_v25 = vadd.f32 %v395_v14, %v138_v2  ;;  %v491_v27 = vadd.f32 %v490_v15, %v230_v9  ;;  %v101_v2 = vld [vmem:[#allocation3 + $0x1d0] sm:$0xff]  ;;  %v256_v7 = vld [vmem:[#allocation3 + $0x6a8] sm:$0xff]  ;;  %v102_v10 = vld [vmem:[#allocation3 + $0x1d8] sm:$0xff] }
  0x50   :  { %v513_v38 = vadd.f32 %v512_v29, %v251_v22  ;;  %v542_v54 = vadd.f32 %v541_v44, %v279_v39  ;;  %v405_v60 = vadd.f32 %v404_v50, %v146_v45  ;;  %v149_v9 = vld [vmem:[#allocation3 + $0x350] sm:$0xff]  ;;  %v283_v12 = vld [vmem:[#allocation3 + $0x780] sm:$0xff]  ;;  %v150_v17 = vld [vmem:[#allocation3 + $0x358] sm:$0xff] }
  0x51   :  { %v353_v32 = vadd.f32 %v352_v21, %v96_v16  ;;  %397 = vadd.xlane.f32.xlu2 %v396_v25  ;;  %v492_v36 = vadd.f32 %v491_v27, %v231_v20  ;;  %v257_v15 = vld [vmem:[#allocation3 + $0x6b0] sm:$0xff]  ;;  %v103_v18 = vld [vmem:[#allocation3 + $0x1e0] sm:$0xff]  ;;  %v284_v20 = vld [vmem:[#allocation3 + $0x788] sm:$0xff] }
  0x52   :  { %v514_v48 = vadd.f32 %v513_v38, %v252_v33  ;;  %v543_v63 = vadd.f32 %v542_v54, %v280_v49  ;;  %v406_v5 = vadd.f32 %v405_v60, %v147_v55  ;;  %v258_v23 = vld [vmem:[#allocation3 + $0x6b8] sm:$0xff]  ;;  %v151_v25 = vld [vmem:[#allocation3 + $0x360] sm:$0xff]  ;;  %v152_v33 = vld [vmem:[#allocation3 + $0x368] sm:$0xff] }
  0x53   :  { %v354_v42 = vadd.f32 %v353_v32, %v97_v28  ;;  %v493_v46 = vadd.f32 %v492_v36, %v232_v26  ;;  %v104_v26 = vld [vmem:[#allocation3 + $0x1e8] sm:$0xff]  ;;  %v285_v28 = vld [vmem:[#allocation3 + $0x790] sm:$0xff]  ;;  %v259_v31 = vld [vmem:[#allocation3 + $0x6c0] sm:$0xff] }
  0x54   :  { %v515_v58 = vadd.f32 %v514_v48, %v253_v43  ;;  %v544_v8 = vadd.f32 %v543_v63, %v281_v59  ;;  %v407_v13 = vadd.f32 %v406_v5, %v148_v0  ;;  %v105_v34 = vld [vmem:[#allocation3 + $0x1f0] sm:$0xff]  ;;  %v286_v36 = vld [vmem:[#allocation3 + $0x798] sm:$0xff]  ;;  %v260_v39 = vld [vmem:[#allocation3 + $0x6c8] sm:$0xff] }
  0x55   :  { %v355_v52 = vadd.f32 %v354_v42, %v98_v37  ;;  %v494_v56 = vadd.f32 %v493_v46, %v233_v41  ;;  %v153_v41 = vld [vmem:[#allocation3 + $0x370] sm:$0xff]  ;;  %v106_v42 = vld [vmem:[#allocation3 + $0x1f8] sm:$0xff]  ;;  %v287_v44 = vld [vmem:[#allocation3 + $0x7a0] sm:$0xff] }
  0x56   :  { %v516_v3 = vadd.f32 %v515_v58, %v254_v53  ;;  %v545_v16 = vadd.f32 %v544_v8, %v282_v4  ;;  %v408_v21 = vadd.f32 %v407_v13, %v149_v9  ;;  %v154_v49 = vld [vmem:[#allocation3 + $0x378] sm:$0xff]  ;;  %v289_v58 = vld [vmem:[#allocation3 + $0x7b0] sm:$0xff]  ;;  %v263_v60 = vld [vmem:[#allocation3 + $0x6e0] sm:$0xff] }
  0x57   :  { %v356_v61 = vadd.f32 %v355_v52, %v99_v47  ;;  %v495_v1 = vadd.f32 %v494_v56, %v234_v51  ;;  %v261_v47 = vld [vmem:[#allocation3 + $0x6d0] sm:$0xff]  ;;  %v288_v51 = vld [vmem:[#allocation3 + $0x7a8] sm:$0xff]  ;;  %v262_v54 = vld [vmem:[#allocation3 + $0x6d8] sm:$0xff] }
  0x58   :  { %v517_v11 = vadd.f32 %v516_v3, %v255_v62  ;;  %v546_v24 = vadd.f32 %v545_v16, %v283_v12  ;;  %v409_v29 = vadd.f32 %v408_v21, %v150_v17  ;;  %v155_v56 = vld [vmem:[#allocation3 + $0x380] sm:$0xff]  ;;  %v156_v62 = vld [vmem:[#allocation3 + $0x388] sm:$0xff]  ;;  %v290_v0 = vld [vmem:[#allocation3 + $0x7b8] sm:$0xff] }
  0x59   :  { %v357_v6 = vadd.f32 %v356_v61, %v100_v57  ;;  %496 = vadd.xlane.f32.xlu1 %v495_v1  ;;  %v157_v4 = vld [vmem:[#allocation3 + $0x390] sm:$0xff]  ;;  %v292_v12 = vld [vmem:[#allocation3 + $0x7c8] sm:$0xff]  ;;  %v159_v16 = vld [vmem:[#allocation3 + $0x3a0] sm:$0xff] }
  0x5a   :  { %v518_v19 = vadd.f32 %v517_v11, %v256_v7  ;;  %v547_v32 = vadd.f32 %v546_v24, %v284_v20  ;;  %v410_v37 = vadd.f32 %v409_v29, %v151_v25  ;;  %v265_v8 = vld [vmem:[#allocation3 + $0x6f0] sm:$0xff]  ;;  %v160_v21 = vld [vmem:[#allocation3 + $0x3a8] sm:$0xff] }
  0x5b   :  { %v358_v14 = vadd.f32 %v357_v6, %v101_v2  ;;  %v264_v2 = vld [vmem:[#allocation3 + $0x6e8] sm:$0xff]  ;;  %v291_v6 = vld [vmem:[#allocation3 + $0x7c0] sm:$0xff] }
  0x5c   :  { %v519_v27 = vadd.f32 %v518_v19, %v257_v15  ;;  %v548_v40 = vadd.f32 %v547_v32, %v285_v28  ;;  %v411_v45 = vadd.f32 %v410_v37, %v152_v33 }
  0x5d   :  { %v359_v22 = vadd.f32 %v358_v14, %v102_v10  ;;  %v158_v10 = vld [vmem:[#allocation3 + $0x398] sm:$0xff] }
  0x5e   :  { %v520_v35 = vadd.f32 %v519_v27, %v258_v23  ;;  %v549_v48 = vadd.f32 %v548_v40, %v286_v36  ;;  %v412_v52 = vadd.f32 %v411_v45, %v153_v41  ;;  %v266_v14 = vld [vmem:[#allocation3 + $0x6f8] sm:$0xff]  ;;  %v295_v27 = vld [vmem:[#allocation3 + $0x7e0] sm:$0xff] }
  0x5f   :  { %v360_v30 = vadd.f32 %v359_v22, %v103_v18  ;;  %v293_v18 = vld [vmem:[#allocation3 + $0x7d0] sm:$0xff]  ;;  %v294_v23 = vld [vmem:[#allocation3 + $0x7d8] sm:$0xff] }
  0x60   :  { %v521_v43 = vadd.f32 %v520_v35, %v259_v31  ;;  %v550_v55 = vadd.f32 %v549_v48, %v287_v44  ;;  %v413_v59 = vadd.f32 %v412_v52, %v154_v49  ;;  %v296_v31 = vld [vmem:[#allocation3 + $0x7e8] sm:$0xff]  ;;  %v297_v35 = vld [vmem:[#allocation3 + $0x7f0] sm:$0xff]  ;;  %v166_v45 = vld [vmem:[#allocation3 + $0x3d8] sm:$0xff] }
  0x61   :  { %v361_v38 = vadd.f32 %v360_v30, %v104_v26  ;;  %v161_v26 = vld [vmem:[#allocation3 + $0x3b0] sm:$0xff]  ;;  %v162_v30 = vld [vmem:[#allocation3 + $0x3b8] sm:$0xff]  ;;  %v168_v49 = vld [vmem:[#allocation3 + $0x3e8] sm:$0xff] }
  0x62   :  { %v522_v50 = vadd.f32 %v521_v43, %v260_v39  ;;  %v551_v61 = vadd.f32 %v550_v55, %v288_v51  ;;  %v414_v1 = vadd.f32 %v413_v59, %v155_v56  ;;  %v298_v39 = vld [vmem:[#allocation3 + $0x7f8] sm:$0xff]  ;;  %v169_v51 = vld [vmem:[#allocation3 + $0x3f0] sm:$0xff]  ;;  %v824_v56 = vmov 0.0  }
  0x63   :  { %v362_v46 = vadd.f32 %v361_v38, %v105_v34  ;;  %v163_v34 = vld [vmem:[#allocation3 + $0x3c0] sm:$0xff]  ;;  %v164_v38 = vld [vmem:[#allocation3 + $0x3c8] sm:$0xff]  ;;  %42 = vst.msk [vmem:[#allocation2] sm:$0x3] %vm41_vm0, %v824_v56  ;;  %v612_v59 = vld [vmem:[%s1000_s1 + $0x38] sm:$0xff] }
  0x64   :  { %v523_v57 = vadd.f32 %v522_v50, %v261_v47  ;;  %v552_v3 = vadd.f32 %v551_v61, %v289_v58  ;;  %v415_v7 = vadd.f32 %v414_v1, %v156_v62  ;;  %v167_v47 = vld [vmem:[#allocation3 + $0x3e0] sm:$0xff]  ;;  %v611_v58 = vld [vmem:[%s1000_s1 + $0x30] sm:$0xff]  ;;  %655 = vmatpush.msra.mxu1 %v612_v59  ;;  %v684_v56 = vld [vmem:[%s1002_s3 + $0x98] sm:$0xff] }
  0x65   :  { %v363_v53 = vadd.f32 %v362_v46, %v106_v42  ;;  %v165_v42 = vld [vmem:[#allocation3 + $0x3d0] sm:$0xff]  ;;  %635 = vmatpush.msra.mxu0 %v611_v58  ;;  %v610_v61 = vld [vmem:[%s1000_s1 + $0x28] sm:$0xff] }
  0x66   :  { %v524_v63 = vadd.f32 %v523_v57, %v262_v54  ;;  %v553_v9 = vadd.f32 %v552_v3, %v290_v0  ;;  %v416_v13 = vadd.f32 %v415_v7, %v157_v4  ;;  %v607_v62 = vld [vmem:[%s1000_s1 + $0x10] sm:$0xff]  ;;  %656 = vmatpush.msra.mxu1 %v610_v61  ;;  %v605_v0 = vld [vmem:[%s1000_s1] sm:$0xff]  ;;  %v606_v1 = vld [vmem:[%s1000_s1 + $0x8] sm:$0xff]  ;;  %v572_v3 = vlaneseq }
  0x67   :  { %364 = vadd.xlane.f32.xlu0 %v363_v53  ;;  %v170_v53 = vld [vmem:[#allocation3 + $0x3f8] sm:$0xff]  ;;  %v667_v59 = vld [vmem:[%s1002_s3 + $0x10] sm:$0xff]  ;;  %v666_v61 = vld [vmem:[%s1002_s3 + $0x8] sm:$0xff] }
  0x68   :  { %v525_v5 = vadd.f32 %v524_v63, %v263_v60  ;;  %v554_v15 = vadd.f32 %v553_v9, %v291_v6  ;;  %v417_v19 = vadd.f32 %v416_v13, %v158_v10  ;;  %v609_v60 = vld [vmem:[%s1000_s1 + $0x20] sm:$0xff]  ;;  %v608_v63 = vld [vmem:[%s1000_s1 + $0x18] sm:$0xff]  ;;  %v695_v9 = vld [vmem:[%s1002_s3 + $0xf0] sm:$0xff]  ;;  %v573_v10 = vand.u32 127, %v572_v3 }
  0x69   :  { %636 = vmatpush.msra.mxu0 %v609_v60  ;;  %657 = vmatpush.msra.mxu1 %v608_v63  ;;  %v680_v6 = vld [vmem:[%s1002_s3 + $0x78] sm:$0xff]  ;;  %v683_v60 = vld [vmem:[%s1002_s3 + $0x90] sm:$0xff]  ;;  %v665_v63 = vld [vmem:[%s1002_s3] sm:$0xff] }
  0x6a   :  { %v526_v11 = vadd.f32 %v525_v5, %v264_v2  ;;  %v555_v20 = vadd.f32 %v554_v15, %v292_v12  ;;  %v418_v24 = vadd.f32 %v417_v19, %v159_v16  ;;  %v696_v7 = vld [vmem:[%s1002_s3 + $0xf8] sm:$0xff]  ;;  %701 = vmatpush.msra.mxu2 %v680_v6  ;;  %v694_v12 = vld [vmem:[%s1002_s3 + $0xe8] sm:$0xff]  ;;  %v575_v13 = vadd.s32 4294967288, %v573_v10  ;;  %v693_v15 = vld [vmem:[%s1002_s3 + $0xe0] sm:$0xff] }
  0x6b   :  { %637 = vmatpush.msra.mxu0 %v607_v62  ;;  %658 = vmatpush.msra.mxu1 %v606_v1  ;;  %v682_v62 = vld [vmem:[%s1002_s3 + $0x88] sm:$0xff]  ;;  %v613_v1 = vld [vmem:[%s1001_s2] sm:$0x3] }
  0x6c   :  { %v527_v17 = vadd.f32 %v526_v11, %v265_v8  ;;  %v556_v25 = vadd.f32 %v555_v20, %v293_v18  ;;  %v419_v28 = vadd.f32 %v418_v24, %v160_v21  ;;  %v679_v8 = vld [vmem:[%s1002_s3 + $0x70] sm:$0xff]  ;;  %721 = vmatpush.msra.mxu3 %v696_v7  ;;  %v678_v11 = vld [vmem:[%s1002_s3 + $0x68] sm:$0xff]  ;;  %v692_v18 = vld [vmem:[%s1002_s3 + $0xd8] sm:$0xff]  ;;  %v583_v21 = vadd.s32 4294967272, %v573_v10 }
  0x6d   :  { %638 = vmatpush.msra.mxu0 %v605_v0  ;;  %702 = vmatpush.msra.mxu2 %v679_v8  ;;  %v579_v24 = vadd.s32 4294967280, %v573_v10  ;;  %v681_v0 = vld [vmem:[%s1002_s3 + $0x80] sm:$0xff]  ;;  %v616_v3 = vperm.slane %v613_v1, 1 }
  0x6e   :  { %v528_v22 = vadd.f32 %v527_v17, %v266_v14  ;;  %v557_v29 = vadd.f32 %v556_v25, %v294_v23  ;;  %v420_v32 = vadd.f32 %v419_v28, %v161_v26  ;;  %722 = vmatpush.msra.mxu3 %v695_v9  ;;  %v677_v14 = vld [vmem:[%s1002_s3 + $0x60] sm:$0xff]  ;;  %v676_v17 = vld [vmem:[%s1002_s3 + $0x58] sm:$0xff]  ;;  %v691_v23 = vld [vmem:[%s1002_s3 + $0xd0] sm:$0xff] }
  0x6f   :  { %703 = vmatpush.msra.mxu2 %v678_v11  ;;  %v674_v28 = vld [vmem:[%s1002_s3 + $0x48] sm:$0xff] }
  0x70   :  { %529 = vadd.xlane.f32.xlu2 %v528_v22  ;;  %v558_v33 = vadd.f32 %v557_v29, %v295_v27  ;;  %v421_v36 = vadd.f32 %v420_v32, %v162_v30  ;;  %723 = vmatpush.msra.mxu3 %v694_v12  ;;  %v675_v22 = vld [vmem:[%s1002_s3 + $0x50] sm:$0xff]  ;;  %v690_v29 = vld [vmem:[%s1002_s3 + $0xc8] sm:$0xff] }
  0x71   :  { %704 = vmatpush.msra.mxu2 %v677_v14 }
  0x72   :  { %v559_v37 = vadd.f32 %v558_v33, %v296_v31  ;;  %v422_v40 = vadd.f32 %v421_v36, %v163_v34  ;;  %724 = vmatpush.msra.mxu3 %v693_v15  ;;  %v673_v34 = vld [vmem:[%s1002_s3 + $0x40] sm:$0xff] }
  0x73   :  { %705 = vmatpush.msra.mxu2 %v676_v17 }
  0x74   :  { %v560_v41 = vadd.f32 %v559_v37, %v297_v35  ;;  %v423_v43 = vadd.f32 %v422_v40, %v164_v38  ;;  %725 = vmatpush.msra.mxu3 %v692_v18  ;;  %v689_v35 = vld [vmem:[%s1002_s3 + $0xc0] sm:$0xff]  ;;  %v672_v37 = vld [vmem:[%s1002_s3 + $0x38] sm:$0xff] }
  0x75   :  { %706 = vmatpush.msra.mxu2 %v675_v22  ;;  %v688_v38 = vld [vmem:[%s1002_s3 + $0xb8] sm:$0xff] }
  0x76   :  { %v561_v44 = vadd.f32 %v560_v41, %v298_v39  ;;  %v424_v46 = vadd.f32 %v423_v43, %v165_v42  ;;  %726 = vmatpush.msra.mxu3 %v691_v23 }
  0x77   :  { %707 = vmatpush.msra.mxu2 %v674_v28 }
  0x78   :  { %562 = vadd.xlane.f32.xlu1 %v561_v44  ;;  %v425_v48 = vadd.f32 %v424_v46, %v166_v45  ;;  %727 = vmatpush.msra.mxu3 %v690_v29  ;;  %v671_v44 = vld [vmem:[%s1002_s3 + $0x30] sm:$0xff] }
  0x79   :  { %708 = vmatpush.msra.mxu2 %v673_v34  ;;  %v687_v45 = vld [vmem:[%s1002_s3 + $0xb0] sm:$0xff] }
  0x7a   :  { %v426_v50 = vadd.f32 %v425_v48, %v167_v47  ;;  %728 = vmatpush.msra.mxu3 %v689_v35  ;;  %v299_v47 = vld [vmem:[#allocation2] sm:$0x3] }
  0x7b   :  { %709 = vmatpush.msra.mxu2 %v672_v37 }
  0x7c   :  { %v427_v52 = vadd.f32 %v426_v50, %v168_v49  ;;  %729 = vmatpush.msra.mxu3 %v688_v38  ;;  %v670_v49 = vld [vmem:[%s1002_s3 + $0x28] sm:$0xff] }
  0x7d   :  { %v686_v50 = vld [vmem:[%s1002_s3 + $0xa8] sm:$0xff]  ;;  %710 = vmatpush.msra.mxu2 %v671_v44 }
  0x7e   :  { %v428_v54 = vadd.f32 %v427_v52, %v169_v51  ;;  %730 = vmatpush.msra.mxu3 %v687_v45 }
  0x7f   :  { %711 = vmatpush.msra.mxu2 %v670_v49 }
  0x80   :  { %v429_v55 = vadd.f32 %v428_v54, %v170_v53  ;;  %v669_v53 = vld [vmem:[%s1002_s3 + $0x20] sm:$0xff]  ;;  %731 = vmatpush.msra.mxu3 %v686_v50 }
  0x81   :  { %v685_v54 = vld [vmem:[%s1002_s3 + $0xa0] sm:$0xff]  ;;  %712 = vmatpush.msra.mxu2 %v669_v53 }
  0x82   :  { %430 = vadd.xlane.f32.xlu0 %v429_v55  ;;  %v668_v55 = vld [vmem:[%s1002_s3 + $0x18] sm:$0xff]  ;;  %732 = vmatpush.msra.mxu3 %v685_v54  ;;  %s825_s3 = smov [#allocation6]  }
  0x83   :  { %713 = vmatpush.msra.mxu2 %v668_v55  ;;  %s749_s27 = sshll.u32 %s825_s3, 4  ;;  %s750_s27 = int_to_ptr.vmem [resolvable:$true] %s749_s27 }
  0x84   :  { %733 = vmatpush.msra.mxu3 %v684_v56 }
  0x85   :  { %714 = vmatpush.msra.mxu2 %v667_v59 }
  0x86   :  { %734 = vmatpush.msra.mxu3 %v683_v60 }
  0x87   :  { %715 = vmatpush.msra.mxu2 %v666_v61 }
  0x88   :  { %735 = vmatpush.msra.mxu3 %v682_v62 }
  0x89   :  { %716 = vmatpush.msra.mxu2 %v665_v63 }
  0x8a   :  { %736 = vmatpush.msra.mxu3 %v681_v0 }
  0xb8   :  { %v464_v57 = vpop.xlane.xlu1 %463 }
  0xb9   :  { %v587_v26 = vperm.slane %v464_v57, %v573_v10 }
  0xbb   :  { %v332_v2 = vpop.xlane.xlu0 %331 }
  0xbc   :  { %v574_v31 = vperm.slane %v332_v2, %v573_v10  ;;  %v615_v2 = vperm.slane %v613_v1, 0  ;;  %v768_v10 = vld [vmem:[%s1003_s4] ss:$0 sm:$0xff] }
  0xc4   :  { %v884_v4 = vpop.xlane.xlu2 %397 }
  0xc5   :  { %v580_v39 = vperm.slane %v884_v4, %v579_v24 }
  0xcc   :  { %v497_v5 = vpop.xlane.xlu1 %496 }
  0xcd   :  { %v588_v19 = vperm.slane %v497_v5, %v575_v13 }
  0xcf   :  { %v589_v32 = vsel %vm577_vm1, %v588_v19, %v587_v26 }
  0xda   :  { %v365_v16 = vpop.xlane.xlu0 %364 }
  0xdb   :  { %v576_v27 = vperm.slane %v365_v16, %v575_v13 }
  0xdd   :  { %v578_v36 = vsel %vm577_vm1, %v576_v27, %v574_v31 }
  0xde   :  { %v582_v46 = vsel %vm581_vm2, %v580_v39, %v578_v36 }
  0xe3   :  { %v530_v20 = vpop.xlane.xlu2 %529 }
  0xe4   :  { %v590_v30 = vperm.slane %v530_v20, %v579_v24 }
  0xe6   :  { %v591_v40 = vsel %vm581_vm2, %v590_v30, %v589_v32 }
  0xeb   :  { %v563_v25 = vpop.xlane.xlu1 %562 }
  0xec   :  { %v592_v33 = vperm.slane %v563_v25, %v583_v21 }
  0xee   :  { %v593_v42 = vsel %vm585_vm3, %v592_v33, %v591_v40 }
  0xf5   :  { %v431_v41 = vpop.xlane.xlu0 %430 }
  0xf6   :  { %v584_v43 = vperm.slane %v431_v41, %v583_v21 }
  0xf8   :  { %v586_v48 = vsel %vm585_vm3, %v584_v43, %v582_v46 }
  0xf9   :  { %v595_v51 = vsel %vm594_vm4, %v593_v42, %v586_v48 }
  0xfa   :  { %v597_v52 = vadd.f32 %v595_v51, %v299_v47 }
  0xfc   :  { %599 = vst.msk [vmem:[#allocation2] sm:$0x3] %vm41_vm0, %v597_v52 }
 0x103   :  { %v603_v57 = vld [vmem:[#allocation2] sm:$0x3] }
 0x104   :  { %v604_v58 = vmul.f32 0.00024414063, %v603_v57 }
 0x106   :  { %761 = vmatmul.msk.f32.vlgmr.msra.gmra.mxu0 %vm619_vm5, %v604_v58  ;;  %762 = vmatmul.msk.f32.vlgmr.msra.gmra.mxu1 %vm619_vm5, %v604_v58 }
 0x183   :  { %v640_v4 = vpop.f32.mrf.mxu0  ;;  %v660_v5 = vpop.f32.mrf.mxu1 }
 0x184   :  { %v641_v6 = vadd.f32 %v640_v4, %v615_v2  ;;  %v661_v7 = vadd.f32 %v660_v5, %v616_v3 }
 0x186   :  { %v663_v8 = vmax.f32 %v641_v6, 0.0  ;;  %v664_v9 = vmax.f32 %v661_v7, 0.0 }
 0x188   :  { %717 = vmatmul.f32.vlgmr.msra.gmra.mxu2 %v663_v8  ;;  %737 = vmatmul.f32.vlgmr.msra.gmra.mxu3 %v664_v9 }
 0x20b   :  { %v718_v11 = vpop.f32.mrf.mxu2  ;;  %v738_v13 = vpop.f32.mrf.mxu3 }
 0x20c   :  { %v719_v12 = vadd.f32 %v768_v10, %v718_v11 }
 0x20e   :  { %v739_v14 = vadd.f32 %v738_v13, %v719_v12 }
 0x210   :  { %v741_v15 = vmax.f32 %v739_v14, 0.0 }
 0x212   :  { %743 = vst.msk [vmem:[#allocation6] sm:$0x3] %vm742_vm6, %v741_v15 }
 0x213   :  { %754 = dma.vmem_to_hbm [thread:$0]  %s750_s27, 32, %s752_s29, [#allocation5]  }
 0x214   :  { %819 = dma.done.wait [#allocation5], 32  }
 0x215   :  { %820 = vsyncadd [#allocation5], 4294967264 }
 0x216   :  { %759 = vsyncpa [#allocation4], 1 }
 0x217   :  { %760 = vsyncpa [#allocation5], 1 }

</bundles_post_ra>
